<compile_context>
chip_gen: v5e
topology: v5e:2x2
jax: 0.10.0
libtpu: 0.0.40
codegen_flags: <defaults>
</compile_context>

<pallas_src>
import jax
import jax.numpy as jnp
from jax.experimental import pallas as pl
from jax.experimental.pallas import tpu as pltpu


def _generator_kernel(pts_ref, zw_ref, w1pT_ref, w2T_ref, b2_ref, w3T_ref, b3_ref,
                      pts_out_ref, max_out_ref):
    """Fused 3-layer MLP over a (3, tm) tile of points from one batch element.

    Everything is computed transposed (features on sublanes, points on lanes)
    so that loads, MXU passes and stores are all lane-dense.
    """
    pts = pts_ref[...]                                   # (3, tm)   xyz rows
    w1pT = w1pT_ref[...]                                 # (H1, 3)   W1[:3]^T
    zw = zw_ref[...]                                     # (H1, 1)   z @ W1[3:] + b1

    # Layer 1: W1[:3]^T @ xyz + zw, done as 3 broadcast FMAs (K=3, VPU).
    h = (zw
         + w1pT[:, 0:1] * pts[0:1, :]
         + w1pT[:, 1:2] * pts[1:2, :]
         + w1pT[:, 2:3] * pts[2:3, :])                   # (H1, tm)
    h = jnp.maximum(h, 0.01 * h)                         # leaky_relu(0.01)

    # Layer 2 (MXU, output lanes = tm).
    h = jnp.dot(w2T_ref[...], h, preferred_element_type=jnp.float32) + b2_ref[...]
    h = jnp.maximum(h, 0.01 * h)                         # leaky_relu(0.01)

    # Layer 3 (MXU) + sigmoid (EUP).
    p = jnp.dot(w3T_ref[...], h, preferred_element_type=jnp.float32) + b3_ref[...]
    p = jax.nn.sigmoid(p)                                # (S, tm)

    pts_out_ref[...] = p                                 # lane-dense (S, tm) store
    # torch.max(..., axis=2).values  -> sublane reduce over S rows (XLU).
    max_out_ref[...] = jnp.max(p, axis=0, keepdims=True)  # (1, tm)


def generator_forward(points, z, params, *, tm=1024):
    """Equivalent of generator.forward(points, z).

    points: (B, N, 3) float32
    z:      (B, 1, Z) float32
    returns (points_out (B, N, S), max_out (B, N, 1))
    """
    w1, b1, w2, b2, w3, b3 = params
    B, N, _ = points.shape
    Z = z.shape[-1]
    H1 = w1.shape[1]
    H2 = w2.shape[1]
    S = w3.shape[1]

    # Clamp the row tile for small point clouds; keep it a multiple of 128.
    tm = max(128, min(tm, pl.cdiv(N, 128) * 128))
    tiles = pl.cdiv(N, tm)
    n_pad = tiles * tm

    # Split h1's weight: first 3 input rows act on xyz, the rest on z.
    w1pT = jnp.transpose(w1[:3])                          # (H1, 3)
    w1_z = w1[3:]                                         # (Z, H1)

    # Per-batch latent contribution (also folds b1). Tiny (B, Z) @ (Z, H1).
    zw = jnp.dot(z.reshape(B, Z), w1_z,
                 precision=jax.lax.Precision.HIGHEST) + b1     # (B, H1)
    zw_col = zw.reshape(B, H1, 1)

    # Single relayout pass: transpose to lane-dense (B, 3, N), pad lanes to n_pad.
    pts_t = jnp.swapaxes(points, 1, 2)                    # (B, 3, N)
    if n_pad != N:
        pts_t = jnp.pad(pts_t, ((0, 0), (0, 0), (0, n_pad - N)))

    # Transposed weights / column biases so the kernel is W^T @ h + b_col.
    w2T = jnp.transpose(w2)                               # (H2, H1)
    b2_col = b2.reshape(H2, 1)
    w3T = jnp.transpose(w3)                               # (S, H2)
    b3_col = b3.reshape(S, 1)

    pts_out_t, max_out_t = pl.pallas_call(
        _generator_kernel,
        out_shape=(
            jax.ShapeDtypeStruct((B, S, n_pad), jnp.float32),
            jax.ShapeDtypeStruct((B, 1, n_pad), jnp.float32),
        ),
        grid_spec=pltpu.PrefetchScalarGridSpec(
            num_scalar_prefetch=0,
            grid=(B, tiles),
            in_specs=[
                pl.BlockSpec((None, 3, tm), lambda b, i: (b, 0, i)),   # xyz (lane-dense)
                pl.BlockSpec((None, H1, 1), lambda b, i: (b, 0, 0)),   # zw column (per batch)
                pl.BlockSpec((H1, 3), lambda b, i: (0, 0)),            # W1[:3]^T
                pl.BlockSpec((H2, H1), lambda b, i: (0, 0)),           # W2^T (full)
                pl.BlockSpec((H2, 1), lambda b, i: (0, 0)),            # b2 column
                pl.BlockSpec((S, H2), lambda b, i: (0, 0)),            # W3^T (full)
                pl.BlockSpec((S, 1), lambda b, i: (0, 0)),             # b3 column
            ],
            out_specs=[
                pl.BlockSpec((None, S, tm), lambda b, i: (b, 0, i)),   # (S, tm) lane-dense
                pl.BlockSpec((None, 1, tm), lambda b, i: (b, 0, i)),   # (1, tm) lane-dense
            ],
        ),
        compiler_params=pltpu.CompilerParams(
            dimension_semantics=("parallel", "parallel")),
    )(pts_t, zw_col, w1pT, w2T, b2_col, w3T, b3_col)

    # Back to the PyTorch interface layout (B, N, S) / (B, N, 1).
    pts_out = jnp.swapaxes(pts_out_t[:, :, :N], 1, 2)
    max_out = jnp.swapaxes(max_out_t[:, :, :N], 1, 2)
    return pts_out, max_out


def _xavier_uniform(key, fan_in, fan_out):
    # nn.init.xavier_uniform_ on a (fan_out, fan_in) weight; we generate the
    # transposed (fan_in, fan_out) matrix directly (same distribution).
    bound = jnp.sqrt(6.0 / (fan_in + fan_out))
    return jax.random.uniform(key, (fan_in, fan_out), jnp.float32, -bound, bound)


def init_generator_params(key, gf_dim=32, gf_split=8, z_dim=32):
    k1, k2, k3 = jax.random.split(key, 3)
    din = z_dim + 3
    h1 = gf_dim * 4
    w1 = _xavier_uniform(k1, din, h1)
    b1 = jnp.zeros((h1,), jnp.float32)
    w2 = _xavier_uniform(k2, h1, gf_dim)
    b2 = jnp.zeros((gf_dim,), jnp.float32)
    w3 = _xavier_uniform(k3, gf_dim, gf_split)
    b3 = jnp.zeros((gf_split,), jnp.float32)
    return (w1, b1, w2, b2, w3, b3)


def _reference_forward(points, z, params):
    """Plain-JAX reference mirroring the PyTorch module, for a sanity check."""
    w1, b1, w2, b2, w3, b3 = params
    B, N, _ = points.shape
    z_rep = jnp.broadcast_to(z, (B, N, z.shape[-1]))
    x = jnp.concatenate([points, z_rep], axis=2)
    h = x @ w1 + b1
    h = jnp.where(h >= 0, h, 0.01 * h)
    h = h @ w2 + b2
    h = jnp.where(h >= 0, h, 0.01 * h)
    p = jax.nn.sigmoid(h @ w3 + b3)
    return p, jnp.max(p, axis=2, keepdims=True)


if __name__ == "__main__":
    # Small shapes consistent with the module: gf_dim=32, gf_split=8, z_dim=32
    B, N, z_dim, gf_dim, gf_split = 2, 16, 32, 32, 8

    key = jax.random.PRNGKey(0)
    kp, kz, kw = jax.random.split(key, 3)

    points = jax.random.normal(kp, (B, N, 3), jnp.float32)
    z = jax.random.normal(kz, (B, 1, z_dim), jnp.float32)
    params = init_generator_params(kw, gf_dim=gf_dim, gf_split=gf_split, z_dim=z_dim)

    pts_out, max_out = generator_forward(points, z, params)
    jax.block_until_ready((pts_out, max_out))

    ref_pts, ref_max = _reference_forward(points, z, params)
    assert pts_out.shape == (B, N, gf_split)
    assert max_out.shape == (B, N, 1)
    assert jnp.allclose(pts_out, ref_pts, atol=2e-5, rtol=2e-5)
    assert jnp.allclose(max_out, ref_max, atol=2e-5, rtol=2e-5)

    print("KERNEL_OK")
</pallas_src>

<mosaic_0001>
module attributes {stable_mosaic.version = 11 : i64} {
  func.func @_generator_kernel(%arg0: i32, %arg1: i32, %arg2: memref<1x3x128xf32, #tpu.memory_space<vmem>>, %arg3: memref<1x128x1xf32, #tpu.memory_space<vmem>>, %arg4: memref<128x3xf32, #tpu.memory_space<vmem>>, %arg5: memref<32x128xf32, #tpu.memory_space<vmem>>, %arg6: memref<32x1xf32, #tpu.memory_space<vmem>>, %arg7: memref<8x32xf32, #tpu.memory_space<vmem>>, %arg8: memref<8x1xf32, #tpu.memory_space<vmem>>, %arg9: memref<1x8x128xf32, #tpu.memory_space<vmem>>, %arg10: memref<1x1x128xf32, #tpu.memory_space<vmem>>) attributes {dimension_semantics = [#tpu.dimension_semantics<parallel>, #tpu.dimension_semantics<parallel>], iteration_bounds = array<i64: 2, 1>, scalar_prefetch = 0 : i64, scratch_operands = 0 : i64, tpu.core_type = #tpu.core_type<tc>, window_params = [{transform_indices = @transform_0, window_bounds = array<i64: 1, 3, 128>}, {transform_indices = @transform_1, window_bounds = array<i64: 1, 128, 1>}, {pipeline_mode = #tpu.pipeline_mode<synchronous>, transform_indices = @transform_2, window_bounds = array<i64: 128, 3>}, {pipeline_mode = #tpu.pipeline_mode<synchronous>, transform_indices = @transform_3, window_bounds = array<i64: 32, 128>}, {pipeline_mode = #tpu.pipeline_mode<synchronous>, transform_indices = @transform_4, window_bounds = array<i64: 32, 1>}, {pipeline_mode = #tpu.pipeline_mode<synchronous>, transform_indices = @transform_5, window_bounds = array<i64: 8, 32>}, {pipeline_mode = #tpu.pipeline_mode<synchronous>, transform_indices = @transform_6, window_bounds = array<i64: 8, 1>}, {transform_indices = @transform_7, window_bounds = array<i64: 1, 8, 128>}, {transform_indices = @transform_8, window_bounds = array<i64: 1, 1, 128>}]} {
    %c0 = arith.constant 0 : index
    %c0_0 = arith.constant 0 : index
    %c0_1 = arith.constant 0 : index
    %0 = vector.load %arg2[%c0, %c0_0, %c0_1] : memref<1x3x128xf32, #tpu.memory_space<vmem>>, vector<1x3x128xf32>
    %1 = vector.shape_cast %0 : vector<1x3x128xf32> to vector<3x128xf32>
    %c0_2 = arith.constant 0 : index
    %c0_3 = arith.constant 0 : index
    %2 = vector.load %arg4[%c0_2, %c0_3] : memref<128x3xf32, #tpu.memory_space<vmem>>, vector<128x3xf32>
    %c0_4 = arith.constant 0 : index
    %c0_5 = arith.constant 0 : index
    %c0_6 = arith.constant 0 : index
    %3 = vector.load %arg3[%c0_4, %c0_5, %c0_6] : memref<1x128x1xf32, #tpu.memory_space<vmem>>, vector<1x128x1xf32>
    %4 = vector.shape_cast %3 : vector<1x128x1xf32> to vector<128x1xf32>
    %5 = vector.extract_strided_slice %2 {offsets = [0, 0], sizes = [128, 1], strides = [1, 1]} : vector<128x3xf32> to vector<128x1xf32>
    %6 = vector.extract_strided_slice %1 {offsets = [0, 0], sizes = [1, 128], strides = [1, 1]} : vector<3x128xf32> to vector<1x128xf32>
    %7 = vector.broadcast %5 : vector<128x1xf32> to vector<128x128xf32>
    %8 = vector.broadcast %6 : vector<1x128xf32> to vector<128x128xf32>
    %9 = arith.mulf %7, %8 : vector<128x128xf32>
    %10 = vector.broadcast %4 : vector<128x1xf32> to vector<128x128xf32>
    %11 = arith.addf %10, %9 : vector<128x128xf32>
    %12 = vector.extract_strided_slice %2 {offsets = [0, 1], sizes = [128, 1], strides = [1, 1]} : vector<128x3xf32> to vector<128x1xf32>
    %13 = vector.extract_strided_slice %1 {offsets = [1, 0], sizes = [1, 128], strides = [1, 1]} : vector<3x128xf32> to vector<1x128xf32>
    %14 = vector.broadcast %12 : vector<128x1xf32> to vector<128x128xf32>
    %15 = vector.broadcast %13 : vector<1x128xf32> to vector<128x128xf32>
    %16 = arith.mulf %14, %15 : vector<128x128xf32>
    %17 = arith.addf %11, %16 : vector<128x128xf32>
    %18 = vector.extract_strided_slice %2 {offsets = [0, 2], sizes = [128, 1], strides = [1, 1]} : vector<128x3xf32> to vector<128x1xf32>
    %19 = vector.extract_strided_slice %1 {offsets = [2, 0], sizes = [1, 128], strides = [1, 1]} : vector<3x128xf32> to vector<1x128xf32>
    %20 = vector.broadcast %18 : vector<128x1xf32> to vector<128x128xf32>
    %21 = vector.broadcast %19 : vector<1x128xf32> to vector<128x128xf32>
    %22 = arith.mulf %20, %21 : vector<128x128xf32>
    %23 = arith.addf %17, %22 : vector<128x128xf32>
    %cst = arith.constant 0.00999999977 : f32
    %24 = vector.broadcast %cst : f32 to vector<128x128xf32>
    %25 = arith.mulf %24, %23 : vector<128x128xf32>
    %26 = arith.maximumf %23, %25 : vector<128x128xf32>
    %c0_7 = arith.constant 0 : index
    %c0_8 = arith.constant 0 : index
    %27 = vector.load %arg5[%c0_7, %c0_8] : memref<32x128xf32, #tpu.memory_space<vmem>>, vector<32x128xf32>
    %cst_9 = arith.constant dense<0.000000e+00> : vector<32x128xf32>
    %28 = tpu.matmul %27, %26, %cst_9 {dimension_numbers = #tpu.dot_dimension_numbers<[1], [0], [0], [1], [0, 0, 1, 1], [], []>} : vector<32x128xf32>, vector<128x128xf32>, vector<32x128xf32> -> vector<32x128xf32>
    %c0_10 = arith.constant 0 : index
    %c0_11 = arith.constant 0 : index
    %29 = vector.load %arg6[%c0_10, %c0_11] : memref<32x1xf32, #tpu.memory_space<vmem>>, vector<32x1xf32>
    %30 = vector.broadcast %29 : vector<32x1xf32> to vector<32x128xf32>
    %31 = arith.addf %28, %30 : vector<32x128xf32>
    %cst_12 = arith.constant 0.00999999977 : f32
    %32 = vector.broadcast %cst_12 : f32 to vector<32x128xf32>
    %33 = arith.mulf %32, %31 : vector<32x128xf32>
    %34 = arith.maximumf %31, %33 : vector<32x128xf32>
    %c0_13 = arith.constant 0 : index
    %c0_14 = arith.constant 0 : index
    %35 = vector.load %arg7[%c0_13, %c0_14] : memref<8x32xf32, #tpu.memory_space<vmem>>, vector<8x32xf32>
    %cst_15 = arith.constant dense<0.000000e+00> : vector<8x128xf32>
    %36 = tpu.matmul %35, %34, %cst_15 {dimension_numbers = #tpu.dot_dimension_numbers<[1], [0], [0], [1], [0, 0, 1, 1], [], []>} : vector<8x32xf32>, vector<32x128xf32>, vector<8x128xf32> -> vector<8x128xf32>
    %c0_16 = arith.constant 0 : index
    %c0_17 = arith.constant 0 : index
    %37 = vector.load %arg8[%c0_16, %c0_17] : memref<8x1xf32, #tpu.memory_space<vmem>>, vector<8x1xf32>
    %38 = vector.broadcast %37 : vector<8x1xf32> to vector<8x128xf32>
    %39 = arith.addf %36, %38 : vector<8x128xf32>
    %40 = arith.negf %39 : vector<8x128xf32>
    %41 = math.exp %40 : vector<8x128xf32>
    %cst_18 = arith.constant 1.000000e+00 : f32
    %42 = vector.broadcast %cst_18 : f32 to vector<8x128xf32>
    %43 = arith.addf %42, %41 : vector<8x128xf32>
    %44 = arith.divf %42, %43 : vector<8x128xf32>
    %c0_19 = arith.constant 0 : index
    %c0_20 = arith.constant 0 : index
    %c0_21 = arith.constant 0 : index
    %45 = vector.load %arg9[%c0_19, %c0_20, %c0_21] : memref<1x8x128xf32, #tpu.memory_space<vmem>>, vector<1x8x128xf32>
    %46 = vector.shape_cast %45 : vector<1x8x128xf32> to vector<8x128xf32>
    %47 = vector.shape_cast %44 : vector<8x128xf32> to vector<1x8x128xf32>
    tpu.vector_store %arg9[%c0_19, %c0_20, %c0_21], %47 {strides = array<i32>} : memref<1x8x128xf32, #tpu.memory_space<vmem>>, vector<1x8x128xf32>,
    %cst_22 = arith.constant dense<0xFF800000> : vector<128xf32>
    %48 = vector.multi_reduction <maximumf>, %44, %cst_22 [0] : vector<8x128xf32> to vector<128xf32>
    %49 = vector.shape_cast %48 : vector<128xf32> to vector<1x128xf32>
    %c0_23 = arith.constant 0 : index
    %c0_24 = arith.constant 0 : index
    %c0_25 = arith.constant 0 : index
    %50 = vector.load %arg10[%c0_23, %c0_24, %c0_25] : memref<1x1x128xf32, #tpu.memory_space<vmem>>, vector<1x1x128xf32>
    %51 = vector.shape_cast %50 : vector<1x1x128xf32> to vector<1x128xf32>
    %52 = vector.shape_cast %49 : vector<1x128xf32> to vector<1x1x128xf32>
    tpu.vector_store %arg10[%c0_23, %c0_24, %c0_25], %52 {strides = array<i32>} : memref<1x1x128xf32, #tpu.memory_space<vmem>>, vector<1x1x128xf32>,
    return
  }
  func.func @transform_0(%arg0: i32, %arg1: i32) -> (i32, i32, i32) {
    %c0_i32 = arith.constant 0 : i32
    %c0_i32_0 = arith.constant 0 : i32
    return %arg0, %c0_i32, %arg1 : i32, i32, i32
  }
  func.func @transform_1(%arg0: i32, %arg1: i32) -> (i32, i32, i32) {
    %c0_i32 = arith.constant 0 : i32
    %c0_i32_0 = arith.constant 0 : i32
    %c0_i32_1 = arith.constant 0 : i32
    return %arg0, %c0_i32, %c0_i32_0 : i32, i32, i32
  }
  func.func @transform_2(%arg0: i32, %arg1: i32) -> (i32, i32) {
    %c0_i32 = arith.constant 0 : i32
    %c0_i32_0 = arith.constant 0 : i32
    %c0_i32_1 = arith.constant 0 : i32
    return %c0_i32, %c0_i32_0 : i32, i32
  }
  func.func @transform_3(%arg0: i32, %arg1: i32) -> (i32, i32) {
    %c0_i32 = arith.constant 0 : i32
    %c0_i32_0 = arith.constant 0 : i32
    %c0_i32_1 = arith.constant 0 : i32
    return %c0_i32, %c0_i32_0 : i32, i32
  }
  func.func @transform_4(%arg0: i32, %arg1: i32) -> (i32, i32) {
    %c0_i32 = arith.constant 0 : i32
    %c0_i32_0 = arith.constant 0 : i32
    %c0_i32_1 = arith.constant 0 : i32
    return %c0_i32, %c0_i32_0 : i32, i32
  }
  func.func @transform_5(%arg0: i32, %arg1: i32) -> (i32, i32) {
    %c0_i32 = arith.constant 0 : i32
    %c0_i32_0 = arith.constant 0 : i32
    %c0_i32_1 = arith.constant 0 : i32
    return %c0_i32, %c0_i32_0 : i32, i32
  }
  func.func @transform_6(%arg0: i32, %arg1: i32) -> (i32, i32) {
    %c0_i32 = arith.constant 0 : i32
    %c0_i32_0 = arith.constant 0 : i32
    %c0_i32_1 = arith.constant 0 : i32
    return %c0_i32, %c0_i32_0 : i32, i32
  }
  func.func @transform_7(%arg0: i32, %arg1: i32) -> (i32, i32, i32) {
    %c0_i32 = arith.constant 0 : i32
    %c0_i32_0 = arith.constant 0 : i32
    return %arg0, %c0_i32, %arg1 : i32, i32, i32
  }
  func.func @transform_8(%arg0: i32, %arg1: i32) -> (i32, i32, i32) {
    %c0_i32 = arith.constant 0 : i32
    %c0_i32_0 = arith.constant 0 : i32
    return %arg0, %c0_i32, %arg1 : i32, i32, i32
  }
}

</mosaic_0001>

<bundles_post_ra>
// kernel: tpu_custom_call.1
= control target key start
LH: loop header
LB: loop body
LE: loop exit
PB: predicated region body
PF: predicated region fallthrough
CT: control target
= control target key end

     0   :  { %s1756_s0 = inlined_call_operand.vmem [shape: f32[2,3,128], index: 0, kind: input, shape index: {}]   ;;  %s1757_s1 = inlined_call_operand.vmem [shape: f32[2,128,1], index: 1, kind: input, shape index: {}]   ;;  %s1758_s2 = inlined_call_operand.vmem [shape: f32[128,3], index: 2, kind: input, shape index: {}]   ;;  %s1759_s3 = inlined_call_operand.vmem [shape: f32[32,128], index: 3, kind: input, shape index: {}]   ;;  %s1760_s4 = inlined_call_operand.vmem [shape: f32[32,1], index: 4, kind: input, shape index: {}]   ;;  %s1761_s5 = inlined_call_operand.vmem [shape: f32[8,32], index: 5, kind: input, shape index: {}]   ;;  %s1762_s6 = inlined_call_operand.vmem [shape: f32[8,1], index: 6, kind: input, shape index: {}]   ;;  %s1763_s7 = inlined_call_operand.hbm [shape: f32[2,8,128], index: 7, kind: output, shape index: {0}]   ;;  %s1764_s8 = inlined_call_operand.hbm [shape: f32[2,1,128], index: 8, kind: output, shape index: {1}]  }
   0x1   :  { %1765 = sst [smem:[#allocation8_spill]] %s1756_s0 }
   0x2   :  { %14 = vsyncpa [#allocation3], 0 }
   0x3   :  { %16 = vsyncpa [#allocation3 + $0x1], 0 }
   0x4   :  { %17 = vsyncpa [#allocation5], 0 }
   0x5   :  { %19 = vsyncpa [#allocation5 + $0x1], 0  ;;  %s1395_s27 = smov 0   ;;  %s1397_s28 = smov 0  }
   0x6   :  { %s1399_s29 = smov 0   ;;  %s1401_s30 = smov 0  }
   0x7   :  { %s1403_s9 = smov 0   ;;  %s1405_s10 = smov 0  }
   0x8 LB: > { %s1080_s11 = sadd.s32 4294967295, %s1345_s10   ;;  %s1081_s12 = sadd.s32 4294967294, %s1345_s10   ;;  %s1345_s10 = sphi %s1405_s10, %s25_s10   ;;  %s1341_s9 = sphi %s1403_s9, %s1773_s9   ;;  %s1337_s30 = sphi %s1401_s30, %s1772_s30   ;;  %s1333_s29 = sphi %s1399_s29, %s1771_s29   ;;  %s1329_s28 = sphi %s1397_s28, %s1770_s28   ;;  %s1325_s27 = sphi %s1395_s27, %s1769_s27  }
   0x9   : > { %s37_s13 = sadd.s32 1, %s1341_s9  ;;  %s205_s14 = sadd.s32 1, %s1333_s29 }
   0xa   : > { %p39_p0 = scmp.ge.s32.totalorder %s37_s13, 2  ;;  %p215_p1 = scmp.ne.s32.totalorder %s1333_s29, %s1329_s28 }
   0xb   : > { %p216_p2 = scmp.eq.s32.totalorder %s1080_s11, 1  ;;  %p221_p3 = scmp.ne.s32.totalorder %s1329_s28, %s1325_s27 }
   0xc   : > { %s1775_s13 = smov (%p39_p0, %s37_s13), 0  ;;  %p222_p5 = scmp.eq.s32.totalorder %s1081_s12, 1 }
   0xd   : > { %p1435_p4 = por %p216_p2, %p215_p1  ;;  %s200_s16 = ssub.s32 %s1341_s9, %s1775_s13 }
   0xe   : > { %p1084_p6 = scmp.ge.s32.totalorder %s1345_s10, 1  ;;  %p203_p7 = scmp.eq.s32.totalorder %s200_s16, 0 }
   0xf   : > { %p1442_p8 = por %p222_p5, %p221_p3  ;;  %p301_p9 = scmp.lt.s32.totalorder %s1345_s10, 3 }
  0x10   : > { %s1448_s18 = scalar_select %p203_p7, %s1333_s29, %s205_s14  }
  0x11   : > { %p302_p10 = pnand %p1084_p6, %p301_p9 }
  0x12   : > { %p346_p11 = scmp.lt.s32.totalorder (!%p302_p10), %s1337_s30, 1  ;;  %s1768_s0 = sld [smem:[#allocation8_spill]] (!%p302_p10) }
  0x13   : > { %305 = sbr.rel (%p302_p10) target bundleno = 669 (0x29d), region = 48  ;;  %s1092_s26 = sshll.u32 (!%p302_p10), %s1337_s30, 3 }
  0x14   : > { %s949_s14 = scalar_lea.hbm (!%p302_p10), %s1763_s7, %s1092_s26  ;;  %s1255_s11 = scalar_lea.hbm (!%p302_p10), %s1763_s7, 16 }
  0x15   : > { %s953_s20 = sshll.u32 (!%p302_p10), %s949_s14, 4  ;;  %s954_s20 = int_to_ptr.hbm [resolvable:$true] %s953_s20 }
  0x16   : > { %s1249_s23 = sshra.s32 (!%p302_p10), %s954_s20, 4  ;;  %s1250_s23 = int_to_ptr.hbm [resolvable:$true] %s1249_s23 }
  0x17   : > { %s1251_s24 = scalar_lea.hbm (!%p302_p10), %s1250_s23, 8  ;;  %p1256_p1 = scmp.lt.s32.totalorder (!%p302_p10), %s1250_s23, %s1763_s7 }
  0x18   : > { %v374_v0 = vld [vmem:[%s1758_s2 + $0x78] sm:$0xff]  ;;  %v1347_v1 = vmov 2   ;;  %v1348_v2 = vmov 0   ;;  %s1457_s21 = scalar_select %p346_p11, %s1337_s30, 1  ;;  %v373_v4 = vld [vmem:[%s1758_s2 + $0x70] sm:$0xff]  ;;  %v1349_v6 = vmov 1  }
  0x19   : > { %1194 = vset.pattern.permute.xlu0 %v1347_v1  ;;  %1191 = vset.pattern.permute.xlu1 %v1348_v2  ;;  %v370_v5 = vld [vmem:[%s1758_s2 + $0x58] sm:$0xff]  ;;  %v371_v9 = vld [vmem:[%s1758_s2 + $0x60] sm:$0xff]  ;;  %v1496_v12 = vld [vmem:[%s1758_s2 + $0x8] sm:$0xff]  ;;  %vm882_vm0 = vcmask 261120   ;;  %p1252_p12 = scmp.ne.s32.totalorder %s1250_s23, %s1251_s24  ;;  %p1257_p2 = scmp.lt.s32.totalorder %s1255_s11, %s1251_s24 }
  0x1a   : > { %742 = vperm.xlu0 %1194, %v374_v0   ;;  %468 = vperm.xlu1 %1191, %v374_v0   ;;  %s1095_s22 = sshll.u32 %s1457_s21, 7  ;;  %v1477_v7 = vld [vmem:[%s1758_s2 + $0x38] sm:$0xff]  ;;  %v1487_v10 = vld [vmem:[%s1758_s2] sm:$0xff]  ;;  %v372_v13 = vld [vmem:[%s1758_s2 + $0x68] sm:$0xff]  ;;  %s1086_s16 = sshll.u32 %s1457_s21, 2 }
  0x1b   : > { %1192 = vset.pattern.permute.xlu2 %v1348_v2  ;;  %s1464_s25 = scalar_lea.vmem %s1757_s1, %s1095_s22  ;;  %v369_v16 = vld [vmem:[%s1758_s2 + $0x50] sm:$0xff]  ;;  %v368_v17 = vld [vmem:[%s1758_s2 + $0x48] sm:$0xff]  ;;  %v367_v19 = vld [vmem:[%s1758_s2 + $0x40] sm:$0xff]  ;;  %s352_s22 = scalar_lea.vmem %s1768_s0, %s1086_s16 }
  0x1c   : > { %v390_v3 = vld [vmem:[%s1464_s25 + $0x78] sm:$0xff]  ;;  %v389_v8 = vld [vmem:[%s1464_s25 + $0x70] sm:$0xff]  ;;  %v388_v11 = vld [vmem:[%s1464_s25 + $0x68] sm:$0xff]  ;;  %s1700_s21 = sand.u32 1, %s1329_s28   ;;  %p1253_p13 = pnand %p1252_p12, %p1435_p4 }
  0x1d   : > { %565 = vperm.xlu2 %1192, %v390_v3   ;;  %v387_v14 = vld [vmem:[%s1464_s25 + $0x60] sm:$0xff]  ;;  %v386_v15 = vld [vmem:[%s1464_s25 + $0x58] sm:$0xff]  ;;  %v385_v18 = vld [vmem:[%s1464_s25 + $0x50] sm:$0xff]  ;;  %p1258_p3 = por %p1257_p2, %p1256_p1 }
  0x1e   : > { %v382_v20 = vld [vmem:[%s1464_s25 + $0x38] sm:$0xff]  ;;  %v384_v21 = vld [vmem:[%s1464_s25 + $0x48] sm:$0xff]  ;;  %v383_v23 = vld [vmem:[%s1464_s25 + $0x40] sm:$0xff]  ;;  %p1254_p0 = pneg %p1253_p13 }
  0x1f   : > { %v1532_v22 = vld [vmem:[%s1758_s2 + $0x28] sm:$0xff]  ;;  %v1541_v24 = vld [vmem:[%s1758_s2 + $0x18] sm:$0xff]  ;;  %v358_v28 = vld [vmem:[%s352_s22] sm:$0x7]  ;;  %s934_s22 = scalar_lea.sflag [#allocation3], %s1700_s21 }
  0x20   : > { %v378_v26 = vld [vmem:[%s1464_s25 + $0x18] sm:$0xff]  ;;  %v1554_v29 = vld [vmem:[%s1758_s2 + $0x30] sm:$0xff]  ;;  %v1557_v31 = vperm.slane %v358_v28, 0  ;;  %v1559_v32 = vperm.slane %v358_v28, 1  ;;  %v1564_v34 = vperm.slane %v358_v28, 2  ;;  %v376_v42 = vld [vmem:[%s1464_s25 + $0x8] sm:$0xff]  ;;  %p1259_p5 = pnand %p1258_p3, %p1254_p0 }
  0x21   : > { %v377_v30 = vld [vmem:[%s1464_s25 + $0x10] sm:$0xff]  ;;  %v375_v50 = vld [vmem:[%s1464_s25] sm:$0xff]  ;;  %v380_v61 = vld [vmem:[%s1464_s25 + $0x28] sm:$0xff] }
  0x22   : > { %463 = vperm.xlu1 %1191, %v373_v4   ;;  %726 = vperm.xlu0 %1194, %v370_v5   ;;  %v381_v43 = vld [vmem:[%s1464_s25 + $0x30] sm:$0xff]  ;;  %v1580_v51 = vld [vmem:[%s1758_s2 + $0x20] sm:$0xff] }
  0x25   : > { %1193 = vset.pattern.permute.xlu2 %v1349_v6 }
  0x26   : > { %645 = vperm.xlu2 %1193, %v374_v0  }
  0x2a   : > { %710 = vperm.xlu0 %1194, %v1477_v7   ;;  %560 = vperm.xlu1 %1191, %v389_v8  }
  0x2e   : > { %641 = vperm.xlu2 %1193, %v373_v4  }
  0x32   : > { %1217 = vset.pattern.permute.xlu0 %v1348_v2  ;;  %453 = vperm.xlu1 %1191, %v371_v9  }
  0x33   : > { %393 = vperm.xlu0 %1217, %v1487_v10  }
  0x36   : > { %1195 = vset.pattern.permute.xlu2 %v1348_v2 }
  0x37   : > { %555 = vperm.xlu2 %1195, %v388_v11  }
  0x3a   : > { %1196 = vset.pattern.permute.xlu1 %v1349_v6 }
  0x3b   : > { %398 = vperm.xlu0 %1217, %v1496_v12   ;;  %637 = vperm.xlu1 %1196, %v372_v13  }
  0x3f   : > { %1197 = vset.pattern.permute.xlu2 %v1347_v1 }
  0x40   : > { %738 = vperm.xlu2 %1197, %v373_v4  }
  0x43   : > { %458 = vperm.xlu0 %1217, %v372_v13   ;;  %1198 = vset.pattern.permute.xlu1 %v1348_v2 }
  0x44   : > { %550 = vperm.xlu1 %1198, %v387_v14  }
  0x48   : > { %1199 = vset.pattern.permute.xlu2 %v1349_v6 }
  0x49   : > { %633 = vperm.xlu2 %1199, %v371_v9  }
  0x4b   : > { %448 = vperm.xlu0 %1217, %v370_v5  }
  0x4c   : > { %1200 = vset.pattern.permute.xlu1 %v1347_v1 }
  0x4d   : > { %734 = vperm.xlu1 %1200, %v372_v13  }
  0x51   : > { %1201 = vset.pattern.permute.xlu2 %v1348_v2 }
  0x52   : > { %443 = vperm.xlu2 %1201, %v369_v16  }
  0x53   : > { %545 = vperm.xlu0 %1217, %v386_v15  }
  0x55   : > { %1202 = vset.pattern.permute.xlu1 %v1349_v6 }
  0x56   : > { %629 = vperm.xlu1 %1202, %v370_v5   ;;  %v379_v5 = vld [vmem:[%s1464_s25 + $0x20] sm:$0xff]  ;;  %s1085_s25 = sshll.u32 %s1700_s21, 3 }
  0x57   : > { %s339_s16 = scalar_lea.vmem [#allocation2], %s1085_s25 }
  0x58   : > { %s951_s19 = sshll.u32 %s339_s16, 4  ;;  %s952_s19 = int_to_ptr.vmem [resolvable:$true] %s951_s19 }
  0x5a   : > { %1203 = vset.pattern.permute.xlu2 %v1347_v1 }
  0x5b   : > { %438 = vperm.xlu0 %1217, %v368_v17   ;;  %730 = vperm.xlu2 %1203, %v371_v9  }
  0x5e   : > { %1204 = vset.pattern.permute.xlu1 %v1348_v2 }
  0x5f   : > { %540 = vperm.xlu1 %1204, %v385_v18  }
  0x63   : > { %428 = vperm.xlu0 %1217, %v1477_v7   ;;  %1205 = vset.pattern.permute.xlu2 %v1349_v6 }
  0x64   : > { %625 = vperm.xlu2 %1205, %v369_v16  }
  0x67   : > { %433 = vperm.xlu1 %1204, %v367_v19  }
  0x6b   : > { %525 = vperm.xlu0 %1217, %v382_v20  }
  0x6c   : > { %1206 = vset.pattern.permute.xlu2 %v1348_v2 }
  0x6d   : > { %535 = vperm.xlu2 %1206, %v384_v21  }
  0x6f   : > { %1207 = vset.pattern.permute.xlu1 %v1349_v6 }
  0x70   : > { %621 = vperm.xlu1 %1207, %v368_v17  }
  0x73   : > { %418 = vperm.xlu0 %1217, %v1532_v22  }
  0x75   : > { %1208 = vset.pattern.permute.xlu2 %v1347_v1 }
  0x76   : > { %722 = vperm.xlu2 %1208, %v369_v16  }
  0x77   : > { %v566_v25 = vpop.permute.xlu2 %565 }
  0x78   : > { %1209 = vset.pattern.permute.xlu1 %v1348_v2 }
  0x79   : > { %530 = vperm.xlu1 %1209, %v383_v23  }
  0x7b   : > { %408 = vperm.xlu0 %1217, %v1541_v24  }
  0x7e   : > { %1210 = vset.pattern.permute.xlu2 %v1349_v6 }
  0x7f   : > { %617 = vperm.xlu2 %1210, %v367_v19  }
  0x80   : > { %v646_v27 = vpop.permute.xlu2 %645 }
  0x81   : > { %1211 = vset.pattern.permute.xlu1 %v1347_v1  ;;  %v664_v37 = vmul.f32 %v1559_v32, %v646_v27 }
  0x82   : > { %718 = vperm.xlu1 %1211, %v368_v17  }
  0x83   : > { %505 = vperm.xlu0 %1217, %v378_v26  }
  0x87   : > { %1212 = vset.pattern.permute.xlu2 %v1348_v2 }
  0x88   : > { %423 = vperm.xlu2 %1212, %v1554_v29   ;;  %v642_v33 = vpop.permute.xlu2 %641 }
  0x89   : > { %v663_v55 = vmul.f32 %v1559_v32, %v642_v33 }
  0x8a   : > { %1213 = vset.pattern.permute.xlu1 %v1349_v6 }
  0x8b   : > { %613 = vperm.xlu1 %1213, %v1477_v7   ;;  %500 = vperm.xlu0 %1217, %v377_v30  }
  0x8c   : > { %v469_v35 = vpop.permute.xlu1 %468  ;;  %v743_v36 = vpop.permute.xlu0 %742 }
  0x8d   : > { %v487_v38 = vmul.f32 %v1557_v31, %v469_v35  ;;  %v761_v40 = vmul.f32 %v1564_v34, %v743_v36 }
  0x8f   : > { %v583_v39 = vadd.f32 %v566_v25, %v487_v38  ;;  %v361_v25 = vld [vmem:[%s1758_s2 + $0x10] sm:$0xff] }
  0x90   : > { %1214 = vset.pattern.permute.xlu2 %v1347_v1 }
  0x91   : > { %v680_v41 = vadd.f32 %v664_v37, %v583_v39  ;;  %714 = vperm.xlu2 %1214, %v367_v19   ;;  %v556_v45 = vpop.permute.xlu2 %555 }
  0x93   : > { %v777_v44 = vadd.f32 %v761_v40, %v680_v41  ;;  %1215 = vset.pattern.permute.xlu1 %v1348_v2  ;;  %495 = vperm.xlu0 %1217, %v376_v42  }
  0x94   : > { %v464_v46 = vpop.permute.xlu1 %463  ;;  %520 = vperm.xlu1 %1215, %v381_v43   ;;  %v1574_v47 = vpop.permute.xlu0 %726 }
  0x95   : > { %v793_v48 = vmul.f32 0.01, %v777_v44  ;;  %v486_v52 = vmul.f32 %v1557_v31, %v464_v46 }
  0x97   : > { %v809_v49 = vmax.f32 %v777_v44, %v793_v48  ;;  %v757_v44 = vmul.f32 %v1564_v34, %v1574_v47 }
  0x99   : > { %838 = vmatpush.msra.mxu0 %v809_v49  ;;  %1096 = vmatpush.msra.mxu2 %v809_v49 }
  0x9a   : > { %1097 = vmatpush.msra.mxu3 %v809_v49  ;;  %1216 = vset.pattern.permute.xlu2 %v1349_v6  ;;  %v739_v57 = vpop.permute.xlu2 %738 }
  0x9b   : > { %490 = vperm.xlu0 %1217, %v375_v50   ;;  %609 = vperm.xlu2 %1216, %v1554_v29   ;;  %v760_v58 = vmul.f32 %v1564_v34, %v739_v57 }
  0x9c   : > { %v561_v53 = vpop.permute.xlu1 %560  ;;  %v1585_v54 = vpop.permute.xlu0 %710  ;;  %413 = vperm.xlu1 %1215, %v1580_v51  }
  0x9d   : > { %v582_v56 = vadd.f32 %v561_v53, %v486_v52 }
  0x9f   : > { %v679_v59 = vadd.f32 %v663_v55, %v582_v56 }
  0xa1   : > { %v776_v60 = vadd.f32 %v760_v58, %v679_v59 }
  0xa3   : > { %v792_v62 = vmul.f32 0.01, %v776_v60  ;;  %1218 = vset.pattern.permute.xlu2 %v1348_v2  ;;  %1227 = vset.pattern.permute.xlu0 %v1347_v1  ;;  %v634_v4 = vpop.permute.xlu2 %633 }
  0xa4   : > { %v454_v63 = vpop.permute.xlu1 %453  ;;  %1219 = vset.pattern.permute.xlu1 %v1349_v6  ;;  %515 = vperm.xlu2 %1218, %v380_v61   ;;  %v661_v18 = vmul.f32 %v1559_v32, %v634_v4 }
  0xa5   : > { %v1594_v0 = vpop.permute.xlu0 %393  ;;  %v808_v3 = vmax.f32 %v776_v60, %v792_v62  ;;  %605 = vperm.xlu1 %1219, %v1532_v22   ;;  %682 = vperm.xlu0 %1227, %v1487_v10   ;;  %v484_v14 = vmul.f32 %v1557_v31, %v454_v63 }
  0xa7   : > { %839 = vmatpush.msra.mxu0 %v808_v3  ;;  %1098 = vmatpush.msra.mxu2 %v808_v3 }
  0xa8   : > { %1099 = vmatpush.msra.mxu3 %v808_v3 }
  0xac   : > { %1220 = vset.pattern.permute.xlu2 %v1347_v1  ;;  %v444_v9 = vpop.permute.xlu2 %443 }
  0xad   : > { %v1599_v7 = vpop.permute.xlu0 %398  ;;  %v638_v8 = vpop.permute.xlu1 %637  ;;  %1221 = vset.pattern.permute.xlu1 %v1348_v2  ;;  %706 = vperm.xlu2 %1220, %v1554_v29  }
  0xae   : > { %510 = vperm.xlu1 %1221, %v379_v5   ;;  %1230 = vset.pattern.permute.xlu0 %v1348_v2  ;;  %v662_v26 = vmul.f32 %v1559_v32, %v638_v8 }
  0xb5   : > { %v459_v11 = vpop.permute.xlu0 %458  ;;  %1222 = vset.pattern.permute.xlu2 %v1349_v6  ;;  %v731_v16 = vpop.permute.xlu2 %730 }
  0xb6   : > { %v551_v13 = vpop.permute.xlu1 %550  ;;  %1223 = vset.pattern.permute.xlu1 %v1347_v1  ;;  %601 = vperm.xlu2 %1222, %v1580_v51   ;;  %v485_v15 = vmul.f32 %v1557_v31, %v459_v11  ;;  %v758_v21 = vmul.f32 %v1564_v34, %v731_v16 }
  0xb7   : > { %702 = vperm.xlu1 %1223, %v1532_v22   ;;  %v580_v17 = vadd.f32 %v551_v13, %v484_v14 }
  0xb8   : > { %v581_v19 = vadd.f32 %v556_v45, %v485_v15 }
  0xb9   : > { %v677_v20 = vadd.f32 %v661_v18, %v580_v17 }
  0xba   : > { %v678_v28 = vadd.f32 %v662_v26, %v581_v19 }
  0xbb   : > { %v774_v30 = vadd.f32 %v758_v21, %v677_v20 }
  0xbd   : > { %v449_v23 = vpop.permute.xlu0 %448  ;;  %v790_v37 = vmul.f32 0.01, %v774_v30 }
  0xbe   : > { %1224 = vset.pattern.permute.xlu2 %v1348_v2  ;;  %v626_v29 = vpop.permute.xlu2 %625  ;;  %v483_v35 = vmul.f32 %v1557_v31, %v449_v23 }
  0xbf   : > { %v735_v27 = vpop.permute.xlu1 %734  ;;  %1225 = vset.pattern.permute.xlu1 %v1349_v6  ;;  %403 = vperm.xlu2 %1224, %v361_v25   ;;  %v806_v6 = vmax.f32 %v774_v30, %v790_v37  ;;  %v659_v52 = vmul.f32 %v1559_v32, %v626_v29 }
  0xc0   : > { %v759_v22 = vmul.f32 %v1564_v34, %v735_v27  ;;  %597 = vperm.xlu1 %1225, %v1541_v24  }
  0xc2   : > { %v775_v33 = vadd.f32 %v759_v22, %v678_v28 }
  0xc4   : > { %v791_v36 = vmul.f32 0.01, %v775_v33 }
  0xc5   : > { %v546_v38 = vpop.permute.xlu0 %545 }
  0xc6   : > { %v807_v39 = vmax.f32 %v775_v33, %v791_v36  ;;  %v579_v40 = vadd.f32 %v546_v38, %v483_v35  ;;  %v753_v33 = vmul.f32 %v1564_v34, %v1585_v54 }
  0xc7   : > { %1226 = vset.pattern.permute.xlu2 %v1347_v1  ;;  %v536_v43 = vpop.permute.xlu2 %535  ;;  %v482_v1 = vmul.f32 %v1557_v31, %v444_v9 }
  0xc8   : > { %v630_v41 = vpop.permute.xlu1 %629  ;;  %840 = vmatpush.msra.mxu0 %v807_v39  ;;  %593 = vperm.xlu1 %1225, %v361_v25  }
  0xc9   : > { %v660_v42 = vmul.f32 %v1559_v32, %v630_v41  ;;  %1100 = vmatpush.msra.mxu2 %v807_v39  ;;  %1101 = vmatpush.msra.mxu3 %v807_v39 }
  0xca   : > { %698 = vperm.xlu2 %1226, %v1580_v51   ;;  %841 = vmatpush.msra.mxu0 %v806_v6 }
  0xcb   : > { %v676_v45 = vadd.f32 %v660_v42, %v579_v40  ;;  %1102 = vmatpush.msra.mxu2 %v806_v6  ;;  %1103 = vmatpush.msra.mxu3 %v806_v6 }
  0xcd   : > { %v773_v46 = vadd.f32 %v757_v44, %v676_v45  ;;  %v439_v62 = vpop.permute.xlu0 %438 }
  0xce   : > { %v481_v8 = vmul.f32 %v1557_v31, %v439_v62 }
  0xcf   : > { %v789_v48 = vmul.f32 0.01, %v773_v46 }
  0xd0   : > { %589 = vperm.xlu1 %1225, %v1496_v12   ;;  %v723_v51 = vpop.permute.xlu2 %722  ;;  %v577_v14 = vadd.f32 %v536_v43, %v481_v8 }
  0xd1   : > { %v541_v49 = vpop.permute.xlu1 %540  ;;  %v805_v50 = vmax.f32 %v773_v46, %v789_v48  ;;  %v756_v47 = vmul.f32 %v1564_v34, %v723_v51 }
  0xd2   : > { %v578_v53 = vadd.f32 %v541_v49, %v482_v1  ;;  %694 = vperm.xlu2 %1226, %v1541_v24  }
  0xd3   : > { %842 = vmatpush.msra.mxu0 %v805_v50  ;;  %1104 = vmatpush.msra.mxu2 %v805_v50 }
  0xd4   : > { %v675_v55 = vadd.f32 %v659_v52, %v578_v53  ;;  %1105 = vmatpush.msra.mxu3 %v805_v50 }
  0xd5   : > { %v429_v9 = vpop.permute.xlu0 %428 }
  0xd6   : > { %v772_v56 = vadd.f32 %v756_v47, %v675_v55  ;;  %v479_v23 = vmul.f32 %v1557_v31, %v429_v9 }
  0xd8   : > { %v788_v57 = vmul.f32 0.01, %v772_v56  ;;  %585 = vperm.xlu1 %1225, %v1487_v10  }
  0xd9   : > { %v434_v58 = vpop.permute.xlu1 %433  ;;  %v618_v60 = vpop.permute.xlu2 %617 }
  0xda   : > { %690 = vperm.xlu2 %1226, %v361_v25   ;;  %v804_v59 = vmax.f32 %v772_v56, %v788_v57  ;;  %v480_v63 = vmul.f32 %v1557_v31, %v434_v58  ;;  %v657_v10 = vmul.f32 %v1559_v32, %v618_v60 }
  0xdc   : > { %843 = vmatpush.msra.mxu0 %v804_v59  ;;  %1106 = vmatpush.msra.mxu2 %v804_v59 }
  0xdd   : > { %1107 = vmatpush.msra.mxu3 %v804_v59  ;;  %v526_v25 = vpop.permute.xlu0 %525 }
  0xde   : > { %v575_v22 = vadd.f32 %v526_v25, %v479_v23 }
  0xe0   : > { %1228 = vset.pattern.permute.xlu1 %v1348_v2 }
  0xe2   : > { %686 = vperm.xlu2 %1226, %v1496_v12   ;;  %v622_v24 = vpop.permute.xlu1 %621  ;;  %v424_v61 = vpop.permute.xlu2 %423 }
  0xe3   : > { %v658_v11 = vmul.f32 %v1559_v32, %v622_v24  ;;  %v478_v38 = vmul.f32 %v1557_v31, %v424_v61 }
  0xe5   : > { %v674_v16 = vadd.f32 %v658_v11, %v577_v14  ;;  %v419_v46 = vpop.permute.xlu0 %418 }
  0xe6   : > { %v477_v59 = vmul.f32 %v1557_v31, %v419_v46  ;;  %v815_v46 = vld [vmem:[%s1760_s4 + $0x8] sm:$0xff] }
  0xea   : > { %1229 = vset.pattern.permute.xlu2 %v1348_v2 }
  0xeb   : > { %v531_v3 = vpop.permute.xlu1 %530  ;;  %v715_v5 = vpop.permute.xlu2 %714 }
  0xec   : > { %v576_v4 = vadd.f32 %v531_v3, %v480_v63  ;;  %v754_v12 = vmul.f32 %v1564_v34, %v715_v5 }
  0xed   : > { %v409_v52 = vpop.permute.xlu0 %408 }
  0xee   : > { %v673_v13 = vadd.f32 %v657_v10, %v576_v4  ;;  %v475_v14 = vmul.f32 %v1557_v31, %v409_v52 }
  0xf0   : > { %v770_v17 = vadd.f32 %v754_v12, %v673_v13 }
  0xf2   : > { %v786_v20 = vmul.f32 0.01, %v770_v17 }
  0xf4   : > { %v719_v15 = vpop.permute.xlu1 %718  ;;  %v802_v28 = vmax.f32 %v770_v17, %v786_v20 }
  0xf5   : > { %v755_v2 = vmul.f32 %v1564_v34, %v719_v15  ;;  %v610_v18 = vpop.permute.xlu2 %609  ;;  %v506_v55 = vpop.permute.xlu0 %505 }
  0xf6   : > { %v655_v39 = vmul.f32 %v1559_v32, %v610_v18  ;;  %v571_v17 = vadd.f32 %v506_v55, %v475_v14 }
  0xf7   : > { %v771_v19 = vadd.f32 %v755_v2, %v674_v16 }
  0xf9   : > { %v787_v21 = vmul.f32 0.01, %v771_v19 }
  0xfb   : > { %v803_v26 = vmax.f32 %v771_v19, %v787_v21 }
  0xfd   : > { %v614_v27 = vpop.permute.xlu1 %613  ;;  %844 = vmatpush.msra.mxu0 %v803_v26  ;;  %1108 = vmatpush.msra.mxu2 %v803_v26  ;;  %v501_v5 = vpop.permute.xlu0 %500 }
  0xfe   : > { %v656_v29 = vmul.f32 %v1559_v32, %v614_v27  ;;  %1109 = vmatpush.msra.mxu3 %v803_v26  ;;  %v516_v30 = vpop.permute.xlu2 %515 }
  0xff   : > { %845 = vmatpush.msra.mxu0 %v802_v28  ;;  %1110 = vmatpush.msra.mxu2 %v802_v28  ;;  %v573_v62 = vadd.f32 %v516_v30, %v477_v59 }
 0x100   : > { %v672_v35 = vadd.f32 %v656_v29, %v575_v22  ;;  %1111 = vmatpush.msra.mxu3 %v802_v28 }
 0x102   : > { %v769_v36 = vadd.f32 %v753_v33, %v672_v35 }
 0x104   : > { %v785_v37 = vmul.f32 0.01, %v769_v36 }
 0x105   : > { %v496_v20 = vpop.permute.xlu0 %495 }
 0x106   : > { %v521_v40 = vpop.permute.xlu1 %520  ;;  %v801_v41 = vmax.f32 %v769_v36, %v785_v37  ;;  %v817_v36 = vld [vmem:[%s1760_s4 + $0x18] sm:$0xff] }
 0x107   : > { %v574_v42 = vadd.f32 %v521_v40, %v478_v38  ;;  %v707_v6 = vpop.permute.xlu2 %706  ;;  %835 = vperm.xlu1 %1228, %v817_v36   ;;  %v816_v38 = vld [vmem:[%s1760_s4 + $0x10] sm:$0xff] }
 0x108   : > { %846 = vmatpush.msra.mxu0 %v801_v41  ;;  %1112 = vmatpush.msra.mxu2 %v801_v41  ;;  %v752_v44 = vmul.f32 %v1564_v34, %v707_v6 }
 0x109   : > { %v671_v43 = vadd.f32 %v655_v39, %v574_v42  ;;  %1113 = vmatpush.msra.mxu3 %v801_v41  ;;  %v473_v39 = vmul.f32 %v1557_v31, %v1599_v7  ;;  %830 = vperm.xlu2 %1229, %v816_v38   ;;  %v814_v7 = vld [vmem:[%s1760_s4] sm:$0xff] }
 0x10b   : > { %v768_v45 = vadd.f32 %v752_v44, %v671_v43  ;;  %v569_v6 = vadd.f32 %v496_v20, %v473_v39  ;;  %v875_v20 = vld [vmem:[%s1761_s5] sm:$0xff] }
 0x10d   : > { %v784_v54 = vmul.f32 0.01, %v768_v45  ;;  %v491_v37 = vpop.permute.xlu0 %490 }
 0x10e   : > { %v414_v48 = vpop.permute.xlu1 %413 }
 0x10f   : > { %v800_v1 = vmax.f32 %v768_v45, %v784_v54  ;;  %v476_v51 = vmul.f32 %v1557_v31, %v414_v48  ;;  %825 = vperm.xlu1 %1228, %v815_v46  }
 0x110   : > { %v602_v49 = vpop.permute.xlu2 %601 }
 0x111   : > { %847 = vmatpush.msra.mxu0 %v800_v1  ;;  %1114 = vmatpush.msra.mxu2 %v800_v1  ;;  %v653_v56 = vmul.f32 %v1559_v32, %v602_v49  ;;  %v472_v49 = vmul.f32 %v1557_v31, %v1594_v0  ;;  %v812_v0 = vld [vmem:[%s1759_s3 + $0x10] sm:$0xff] }
 0x112   : > { %1115 = vmatpush.msra.mxu3 %v800_v1  ;;  %820 = vperm.xlu2 %1229, %v814_v7  }
 0x117   : > { %v606_v50 = vpop.permute.xlu1 %605  ;;  %v683_v1 = vpop.permute.xlu0 %682 }
 0x118   : > { %v654_v60 = vmul.f32 %v1559_v32, %v606_v50 }
 0x119   : > { %v404_v53 = vpop.permute.xlu2 %403 }
 0x11a   : > { %v670_v3 = vadd.f32 %v654_v60, %v573_v62  ;;  %v474_v21 = vmul.f32 %v1557_v31, %v404_v53  ;;  %v568_v53 = vadd.f32 %v491_v37, %v472_v49  ;;  %v811_v31 = vld [vmem:[%s1759_s3 + $0x8] sm:$0xff]  ;;  %v876_v60 = vld [vmem:[%s1762_s6] sm:$0xff] }
 0x11b   : > { %879 = vperm.xlu0 %1230, %v876_v60  }
 0x11c   : > { %v570_v28 = vadd.f32 %v501_v5, %v474_v21 }
 0x120   : > { %v511_v47 = vpop.permute.xlu1 %510 }
 0x121   : > { %v572_v57 = vadd.f32 %v511_v47, %v476_v51  ;;  %v746_v47 = vmul.f32 %v1564_v34, %v683_v1 }
 0x123   : > { %v669_v24 = vadd.f32 %v653_v56, %v572_v57 }
 0x124   : > { %v699_v58 = vpop.permute.xlu2 %698 }
 0x125   : > { %v750_v61 = vmul.f32 %v1564_v34, %v699_v58 }
 0x127   : > { %v766_v10 = vadd.f32 %v750_v61, %v669_v24 }
 0x129   : > { %v703_v63 = vpop.permute.xlu1 %702  ;;  %v782_v9 = vmul.f32 0.01, %v766_v10 }
 0x12a   : > { %v751_v4 = vmul.f32 %v1564_v34, %v703_v63 }
 0x12b   : > { %v798_v16 = vmax.f32 %v766_v10, %v782_v9 }
 0x12c   : > { %v767_v8 = vadd.f32 %v751_v4, %v670_v3  ;;  %v695_v13 = vpop.permute.xlu2 %694 }
 0x12d   : > { %v749_v18 = vmul.f32 %v1564_v34, %v695_v13 }
 0x12e   : > { %v783_v11 = vmul.f32 0.01, %v767_v8 }
 0x130   : > { %v799_v12 = vmax.f32 %v767_v8, %v783_v11 }
 0x132   : > { %v598_v15 = vpop.permute.xlu1 %597  ;;  %848 = vmatpush.msra.mxu0 %v799_v12  ;;  %1116 = vmatpush.msra.mxu2 %v799_v12 }
 0x133   : > { %v652_v2 = vmul.f32 %v1559_v32, %v598_v15  ;;  %1117 = vmatpush.msra.mxu3 %v799_v12 }
 0x134   : > { %849 = vmatpush.msra.mxu0 %v798_v16  ;;  %1118 = vmatpush.msra.mxu2 %v798_v16  ;;  %v691_v25 = vpop.permute.xlu2 %690 }
 0x135   : > { %v668_v19 = vadd.f32 %v652_v2, %v571_v17  ;;  %1119 = vmatpush.msra.mxu3 %v798_v16  ;;  %v748_v30 = vmul.f32 %v1564_v34, %v691_v25 }
 0x137   : > { %v765_v23 = vadd.f32 %v749_v18, %v668_v19 }
 0x139   : > { %v781_v26 = vmul.f32 0.01, %v765_v23 }
 0x13a   : > { %v594_v27 = vpop.permute.xlu1 %593 }
 0x13b   : > { %v651_v22 = vmul.f32 %v1559_v32, %v594_v27  ;;  %v797_v29 = vmax.f32 %v765_v23, %v781_v26 }
 0x13c   : > { %v687_v41 = vpop.permute.xlu2 %686 }
 0x13d   : > { %v667_v33 = vadd.f32 %v651_v22, %v570_v28  ;;  %850 = vmatpush.msra.mxu0 %v797_v29  ;;  %1120 = vmatpush.msra.mxu2 %v797_v29  ;;  %v747_v45 = vmul.f32 %v1564_v34, %v687_v41  ;;  %v813_v34 = vld [vmem:[%s1759_s3 + $0x18] sm:$0xff] }
 0x13e   : > { %1121 = vmatpush.msra.mxu3 %v797_v29 }
 0x13f   : > { %v764_v35 = vadd.f32 %v748_v30, %v667_v33 }
 0x141   : > { %v780_v40 = vmul.f32 0.01, %v764_v35 }
 0x142   : > { %v590_v42 = vpop.permute.xlu1 %589 }
 0x143   : > { %v650_v43 = vmul.f32 %v1559_v32, %v590_v42  ;;  %v796_v44 = vmax.f32 %v764_v35, %v780_v40 }
 0x145   : > { %v666_v54 = vadd.f32 %v650_v43, %v569_v6  ;;  %851 = vmatpush.msra.mxu0 %v796_v44  ;;  %1122 = vmatpush.msra.mxu2 %v796_v44 }
 0x146   : > { %1123 = vmatpush.msra.mxu3 %v796_v44 }
 0x147   : > { %v763_v48 = vadd.f32 %v747_v45, %v666_v54 }
 0x149   : > { %v779_v50 = vmul.f32 0.01, %v763_v48 }
 0x14a   : > { %v586_v52 = vpop.permute.xlu1 %585 }
 0x14b   : > { %v649_v51 = vmul.f32 %v1559_v32, %v586_v52  ;;  %v795_v55 = vmax.f32 %v763_v48, %v779_v50  ;;  %v810_v32 = vld [vmem:[%s1759_s3] sm:$0xff] }
 0x14d   : > { %v665_v56 = vadd.f32 %v649_v51, %v568_v53  ;;  %852 = vmatpush.msra.mxu0 %v795_v55  ;;  %1124 = vmatpush.msra.mxu2 %v795_v55 }
 0x14e   : > { %1125 = vmatpush.msra.mxu3 %v795_v55 }
 0x14f   : > { %v762_v57 = vadd.f32 %v746_v47, %v665_v56 }
 0x151   : > { %v778_v58 = vmul.f32 0.01, %v762_v57 }
 0x153   : > { %v794_v59 = vmax.f32 %v762_v57, %v778_v58 }
 0x155   : > { %853 = vmatpush.msra.mxu0 %v794_v59  ;;  %1126 = vmatpush.msra.mxu2 %v794_v59 }
 0x156   : > { %1127 = vmatpush.msra.mxu3 %v794_v59  ;;  %857 = vmatmul.f32.vlgmr.msra.gmra.mxu2 %v811_v31 }
 0x157   : > { %860 = vmatmul.f32.vlgmr.msra.gmra.mxu3 %v812_v0  ;;  %854 = vmatmul.f32.vlgmr.msra.gmra.mxu0 %v810_v32 }
 0x15f   : > { %863 = vmatmul.f32.gmra.mxu3 %v813_v34 }
 0x163   : > { %v831_v61 = vpop.permute.xlu2 %830 }
 0x16c   : > { %v821_v4 = vpop.permute.xlu2 %820 }
 0x179   : > { %v836_v24 = vpop.permute.xlu1 %835 }
 0x181   : > { %v826_v63 = vpop.permute.xlu1 %825 }
 0x18d   : > { %v880_v21 = vpop.permute.xlu0 %879 }
 0x1d4   : > { %v855_v5 = vpop.f32.mrf.mxu0 }
 0x1d5   : > { %v856_v12 = vadd.f32 %v855_v5, %v821_v4 }
 0x1d7   : > { %v867_v17 = vmul.f32 0.01, %v856_v12 }
 0x1d9   : > { %v858_v3 = vpop.f32.mrf.mxu2  ;;  %v871_v19 = vmax.f32 %v856_v12, %v867_v17 }
 0x1da   : > { %v861_v62 = vpop.f32.mrf.mxu3  ;;  %v859_v9 = vadd.f32 %v858_v3, %v826_v63 }
 0x1db   : > { %v862_v10 = vadd.f32 %v861_v62, %v831_v61 }
 0x1dc   : > { %v868_v15 = vmul.f32 0.01, %v859_v9 }
 0x1dd   : > { %v869_v13 = vmul.f32 0.01, %v862_v10 }
 0x1de   : > { %v872_v18 = vmax.f32 %v859_v9, %v868_v15 }
 0x1df   : > { %v873_v2 = vmax.f32 %v862_v10, %v869_v13 }
 0x1e2   : > { %v864_v8 = vpop.f32.mrf.mxu3 }
 0x1e3   : > { %v865_v11 = vadd.f32 %v864_v8, %v836_v24 }
 0x1e5   : > { %v870_v14 = vmul.f32 0.01, %v865_v11 }
 0x1e7   : > { %v874_v16 = vmax.f32 %v865_v11, %v870_v14 }
 0x1e9   : > { %898 = vmatpush.msra.mxu1 %v874_v16 }
 0x1eb   : > { %899 = vmatpush.msra.mxu1 %v873_v2 }
 0x1ed   : > { %900 = vmatpush.msra.mxu1 %v872_v18 }
 0x1ef   : > { %901 = vmatpush.msra.mxu1 %v871_v19 }
 0x1f0   : > { %1089 = vmatmul.msk.f32.vlgmr.msra.gmra.mxu1 %vm882_vm0, %v875_v20 }
 0x26d   : > { %v903_v23 = vpop.f32.mrf.mxu1 }
 0x26e   : > { %v904_v25 = vadd.f32 %v903_v23, %v880_v21 }
 0x270   : > { %v1090_v26 = vmul.f32 -1.442695, %v904_v25 }
 0x272   : > { %1231 = vpow2.f32 %v1090_v26 }
 0x278   : > { %v1232_v27 = vpop.eup %1231 }
 0x279   : > { %v909_v28 = vadd.f32 1.0, %v1232_v27 }
 0x27b   : > { %1233 = vrcp.f32 %v909_v28  ;;  %v921_v33 = vand.u32 2147483648, %v909_v28  ;;  %v919_v36 = vand.u32 2147483647, %v909_v28  ;;  %vm915_vm2 = vweird.f32 %v909_v28 }
 0x27d   : > { %v922_v38 = vor.u32 1.1754944e-38, %v921_v33  ;;  %vm920_vm4 = vcmp.eq.f32.partialorder %v919_v36, 8.507059e+37 }
 0x281   : > { %v1234_v22 = vpop.eup %1233 }
 0x282   : > { %v911_v29 = vmul.f32 %v1234_v22, %v909_v28  ;;  %vm916_vm1 = vweird.f32 %v1234_v22 }
 0x283   : > { %vm917_vm3 = vmor %vm915_vm2, %vm916_vm1 }
 0x284   : > { %v912_v30 = vsub.f32 1.0, %v911_v29 }
 0x286   : > { %v913_v35 = vmul.f32 %v1234_v22, %v912_v30 }
 0x288   : > { %v914_v37 = vadd.f32 %v1234_v22, %v913_v35 }
 0x28a   : > { %v918_v39 = vsel %vm917_vm3, %v1234_v22, %v914_v37 }
 0x28b   : > { %v923_v40 = vsel %vm920_vm4, %v922_v38, %v918_v39 }
 0x28c   : > { %925 = vst [vmem:[%s339_s16] sm:$0xff] %v923_v40  ;;  %v926_v41 = vrot.slane %v923_v40, 4 }
 0x28d   : > { %1262 = shalt.err (!%p1259_p5)
}
 0x28e   : > { %1128 = dma.vmem_to_hbm [thread:$0]  (%p1435_p4), %s952_s19, 128, %s954_s20, %s934_s22   ;;  %v927_v42 = vmax.f32 %v923_v40, %v926_v41 }
 0x28f   : > { %s963_s26 = scalar_lea.hbm %s1764_s8, %s1337_s30  ;;  %s345_s25 = scalar_lea.vmem [#allocation4], %s1700_s21 }
 0x290   : > { %v928_v6 = vrot.slane %v927_v42, 2  ;;  %s965_s23 = sshll.u32 %s345_s25, 4  ;;  %s967_s24 = sshll.u32 %s963_s26, 4  ;;  %s966_s23 = int_to_ptr.vmem [resolvable:$true] %s965_s23  ;;  %s968_s24 = int_to_ptr.hbm [resolvable:$true] %s967_s24 }
 0x291   : > { %s939_s11 = scalar_lea.sflag [#allocation5], %s1700_s21  ;;  %s1277_s12 = sshra.s32 %s968_s24, 4  ;;  %s1278_s12 = int_to_ptr.hbm [resolvable:$true] %s1277_s12 }
 0x292   : > { %v929_v43 = vmax.f32 %v927_v42, %v928_v6  ;;  %s1279_s19 = scalar_lea.hbm %s1278_s12, 1  ;;  %s1283_s30 = scalar_lea.hbm %s1764_s8, 2 }
 0x293   : > { %p1280_p6 = scmp.ne.s32.totalorder %s1278_s12, %s1279_s19  ;;  %p1284_p10 = scmp.lt.s32.totalorder %s1278_s12, %s1764_s8 }
 0x294   : > { %v930_v44 = vrot.slane %v929_v43, 1  ;;  %p1285_p11 = scmp.lt.s32.totalorder %s1283_s30, %s1279_s19 }
 0x295   : > { %p1281_p7 = pnand %p1280_p6, %p1435_p4 }
 0x296   : > { %v931_v45 = vmax.f32 %v929_v43, %v930_v44  ;;  %p1286_p12 = por %p1285_p11, %p1284_p10 }
 0x297   : > { %p1282_p9 = pneg %p1281_p7 }
 0x298   : > { %932 = vst [vmem:[%s345_s25] sm:$0x1] %v931_v45 }
 0x299   : > { %p1287_p13 = pnand %p1286_p12, %p1282_p9 }
 0x29b   : > { %1290 = shalt.err (!%p1287_p13)
}
 0x29c   : > { %1129 = dma.vmem_to_hbm [thread:$0]  (%p1435_p4), %s966_s23, 16, %s968_s24, %s939_s11  }
 0x29d PF: > { %p1139_p0 = scmp.ge.s32.totalorder %s1345_s10, 2  ;;  %s979_s21 = sand.u32 1, %s1325_s27  }
 0x29e   : > { %s980_s16 = scalar_lea.sflag [#allocation3], %s979_s21 }
 0x29f   : > { %p1133_p1 = pnand %p1139_p0, %p1442_p8 }
 0x2a1   : > { %p1134_p2 = pneg %p1133_p1 }
 0x2a3   : > { %1316 = dma.done.wait (%p1134_p2), %s980_s16, 128  }
 0x2a4   : > { %1318 = vsyncadd (%p1134_p2), %s980_s16, 4294967168  ;;  %s990_s26 = scalar_lea.sflag [#allocation5], %s979_s21 }
 0x2a5   : > { %1320 = dma.done.wait (%p1134_p2), %s990_s26, 16  }
 0x2a6   : > { %1322 = vsyncadd (%p1134_p2), %s990_s26, 4294967280  ;;  %s25_s10 = sadd.s32 1, %s1345_s10   ;;  %s1769_s27 = smov %s1329_s28 }
 0x2a7   : > { %p22_p3 = scmp.ge.s32.totalorder %s25_s10, 4   ;;  %s1770_s28 = smov %s1333_s29 }
 0x2a8   : > { %s1771_s29 = smov %s1448_s18  ;;  %s1772_s30 = smov %s1341_s9 }
 0x2a9   : > { %s1773_s9 = smov %s1775_s13  ;;  %24 = sbr.rel (!%p22_p3) target bundleno = 8 (0x8), region = 103 }
 0x2ae   :  { %995 = vsyncpa [#allocation3], 1 }
 0x2af   :  { %997 = vsyncpa [#allocation3 + $0x1], 1 }
 0x2b0   :  { %998 = vsyncpa [#allocation5], 1 }
 0x2b1   :  { %1000 = vsyncpa [#allocation5 + $0x1], 1 }

</bundles_post_ra>
